<compile_context>
chip_gen: v5e
topology: v5e:2x2
jax: 0.10.0
libtpu: 0.0.40
codegen_flags: <defaults>
</compile_context>

<pallas_src>
import math
from functools import partial

import jax
import jax.numpy as jnp
from jax.experimental import pallas as pl
from jax.experimental.pallas import tpu as pltpu


# ------------------------------- Pallas kernel -------------------------------
def _vfunc_kernel(xs_ref, act_ref, w1s_ref, w1a_ref, b1_ref, w2_ref, b2_ref,
                  o_ref, *, n_actions, seq_len):
    """Fused fc1 (+ action row-select) -> ReLU -> fc2 for one batch tile.

    xs_ref : (tm, Ds)   f32  [state | mem states | future states], flat
    act_ref: (tm, T)    i32  [mem actions | future actions]
    w1s_ref: (Ds, Hp)   f32  fc1 weight rows for the state features (reordered)
    w1a_ref: (T*A, Hp)  f32  fc1 weight rows for the action one-hot features
    b1_ref : (1, Hp)    f32
    w2_ref : (1, Hp)    f32
    b2_ref : (1,)       f32  (SMEM scalar)
    o_ref  : (1, tm)    f32  lane-dense output row
    """
    A = n_actions

    # fc1 state part on the MXU, full f32 (matches the fp32 torch module).
    h = jnp.dot(xs_ref[...], w1s_ref[...], preferred_element_type=jnp.float32)
    h = h + b1_ref[...]

    # one_hot(actions) @ W1_action  ==  per-timestep row-select of W1's action
    # rows: no iota/compare/cast one-hot, no masked scratch stores, smaller K.
    for t in range(seq_len):                      # tiny static unroll (T = M+F)
        a_t = act_ref[:, t:t + 1]                 # (tm, 1) int32
        if A == 2:
            h = h + jnp.where(a_t == 0,
                              w1a_ref[A * t:A * t + 1, :],
                              w1a_ref[A * t + 1:A * t + 2, :])
        else:
            sel = jnp.where(a_t == 0, w1a_ref[A * t:A * t + 1, :], 0.0)
            for a in range(1, A):
                sel = jnp.where(a_t == a,
                                w1a_ref[A * t + a:A * t + a + 1, :], sel)
            h = h + sel

    h = jnp.maximum(h, 0.0)

    # fc2 (N=1): VPU multiply + XLU lane reduction, stored lane-dense as (1, tm).
    o_ref[...] = jnp.sum(h * w2_ref[...], axis=-1)[None, :] + b2_ref[0]


def _choose_batch_tile(B, block_b):
    """Batch tile: full batch for small B; otherwise a multiple of 128 so the
    (1, tm) output store is unmasked and input sublanes are aligned, with at
    least 2 grid steps so the "parallel" axis can shard across TensorCores."""
    block_b = max(128, (block_b // 128) * 128)
    if B <= 256:
        return B                                  # single step, block == array
    half = -(-B // 2)                             # cdiv(B, 2)
    half = -(-half // 128) * 128                  # round up to 128
    return max(128, min(block_b, half))


def vfunc_pallas(state, memory_states, memory_actions, future_states,
                 future_actions, w1s_t, w1a, b1, w2_row, b2, *, n_actions,
                 block_b=1024):
    """Fused forward. Returns the (1, B) lane-dense result row."""
    B, S = state.shape
    M = memory_states.shape[1]
    Fh = future_states.shape[1]
    T = M + Fh
    Ds, Hp = w1s_t.shape
    assert Ds == S * (1 + T)
    assert w1a.shape == (T * n_actions, Hp)

    # Cheap XLA glue: one contiguous float block and one contiguous int block
    # per batch row -> a single dense DMA each per tile (no 3D layout padding).
    xs = jnp.concatenate(
        [state, memory_states.reshape(B, M * S), future_states.reshape(B, Fh * S)],
        axis=1)
    acts = jnp.concatenate([memory_actions, future_actions], axis=1).astype(jnp.int32)

    tm = _choose_batch_tile(B, block_b)
    grid = (pl.cdiv(B, tm),)

    return pl.pallas_call(
        partial(_vfunc_kernel, n_actions=n_actions, seq_len=T),
        out_shape=jax.ShapeDtypeStruct((1, B), jnp.float32),
        grid=grid,
        in_specs=[
            pl.BlockSpec((tm, Ds), lambda i: (i, 0)),
            pl.BlockSpec((tm, T), lambda i: (i, 0)),
            pl.BlockSpec((Ds, Hp), lambda i: (0, 0)),            # weights resident
            pl.BlockSpec((T * n_actions, Hp), lambda i: (0, 0)),
            pl.BlockSpec((1, Hp), lambda i: (0, 0)),
            pl.BlockSpec((1, Hp), lambda i: (0, 0)),
            pl.BlockSpec(memory_space=pltpu.MemorySpace.SMEM),    # b2 scalar
        ],
        out_specs=pl.BlockSpec((1, tm), lambda i: (0, i)),        # lane-dense out
        compiler_params=pltpu.CompilerParams(
            dimension_semantics=("parallel",)),                   # megacore batch
    )(xs, acts, w1s_t, w1a, b1, w2_row, b2)


# ------------------------------- model wrapper -------------------------------
def forward(params, state, memory_states, memory_actions, future_states,
            future_actions, *, n_actions, block_b=1024):
    out = vfunc_pallas(state, memory_states, memory_actions, future_states,
                       future_actions, params["w1s_t"], params["w1a"],
                       params["b1"], params["w2_row"], params["b2"],
                       n_actions=n_actions, block_b=block_b)
    return jnp.squeeze(out)   # matches torch .squeeze()


def init_params(key, state_dim, n_actions, memory_length, future_length,
                hidden_dim, lane=128):
    """PyTorch nn.Linear default init + kernel-layout copies.

    Kernel layout: W1^T split/permuted into
      * w1s_t (Ds, Hp): rows for [state | mem states | future states]
      * w1a   (T*A, Hp): one row per (timestep, action) one-hot column
    hidden dim zero-padded 100 -> 128 (numerically inert: relu(0)*0 = 0).
    """
    S, A = state_dim, n_actions
    T = memory_length + future_length
    in_dim = S + (S + A) * T
    hp = ((hidden_dim + lane - 1) // lane) * lane

    k1, k2, k3, k4 = jax.random.split(key, 4)
    bnd1 = 1.0 / math.sqrt(in_dim)
    bnd2 = 1.0 / math.sqrt(hidden_dim)
    w1 = jax.random.uniform(k1, (hidden_dim, in_dim), jnp.float32, -bnd1, bnd1)
    b1 = jax.random.uniform(k2, (hidden_dim,), jnp.float32, -bnd1, bnd1)
    w2 = jax.random.uniform(k3, (1, hidden_dim), jnp.float32, -bnd2, bnd2)
    b2 = jax.random.uniform(k4, (1,), jnp.float32, -bnd2, bnd2)

    # Column permutation of the torch feature order
    # [state | (seq_state_t, onehot_t) x T] -> [state | seq states | onehots].
    state_cols = list(range(S))
    seq_cols, act_cols = [], []
    for t in range(T):
        base = S + t * (S + A)
        seq_cols.extend(range(base, base + S))
        act_cols.extend(range(base + S, base + S + A))

    w1_pad = jnp.zeros((hp, in_dim), jnp.float32).at[:hidden_dim, :].set(w1)
    w1s_t = jnp.transpose(w1_pad[:, jnp.array(state_cols + seq_cols)])   # (Ds, hp)
    w1a = jnp.transpose(w1_pad[:, jnp.array(act_cols)])                  # (T*A, hp)
    b1p = jnp.zeros((1, hp), jnp.float32).at[0, :hidden_dim].set(b1)
    w2p = jnp.zeros((1, hp), jnp.float32).at[0, :hidden_dim].set(w2[0])

    kernel_params = {"w1s_t": w1s_t, "w1a": w1a, "b1": b1p,
                     "w2_row": w2p, "b2": b2}
    raw_params = {"w1": w1, "b1": b1, "w2": w2, "b2": b2}
    return kernel_params, raw_params


# ----------------------------- pure-JAX reference -----------------------------
def encode_sequence(states, actions, n_actions):
    action_embs = jax.nn.one_hot(actions, n_actions, dtype=states.dtype)
    inp = jnp.concatenate([states, action_embs], axis=2)
    return inp.reshape(inp.shape[0], -1)


def reference_forward(raw, state, memory_states, memory_actions,
                      future_states, future_actions, n_actions):
    mem_enc = encode_sequence(memory_states, memory_actions, n_actions)
    fut_enc = encode_sequence(future_states, future_actions, n_actions)
    x = jnp.concatenate([state, mem_enc, fut_enc], axis=1)
    hi = jax.lax.Precision.HIGHEST  # exact fp32 reference (matches torch module)
    h = jnp.maximum(jnp.dot(x, raw["w1"].T, precision=hi) + raw["b1"], 0.0)
    return jnp.squeeze(jnp.dot(h, raw["w2"].T, precision=hi) + raw["b2"])


# TODO(synk): the LSTM + softmax branch (_predict_state / state_prediction_loss)
# is not part of forward() and is not implemented here.

if __name__ == "__main__":
    # Module config (defaults of ContinuousStateLSTMVfunction, with M=F=2).
    state_dim, n_actions = 4, 2
    memory_length, future_length = 2, 2
    linear_hidden_dim = 100

    key = jax.random.PRNGKey(0)
    kparam, kdata = jax.random.split(key)
    params, raw = init_params(kparam, state_dim, n_actions, memory_length,
                              future_length, linear_hidden_dim)

    fwd = jax.jit(partial(forward, n_actions=n_actions))

    # B=2: tiny single-tile case.  B=300: multi-step grid (tm=256) with a
    # masked partial last tile -> exercises the padded-row / masked writeback
    # path flagged in the review.
    for B in (2, 300):
        ks, km, kma, kf, kfa = jax.random.split(jax.random.fold_in(kdata, B), 5)
        state = jax.random.normal(ks, (B, state_dim), jnp.float32)
        memory_states = jax.random.normal(km, (B, memory_length, state_dim), jnp.float32)
        memory_actions = jax.random.randint(kma, (B, memory_length), 0, n_actions)
        future_states = jax.random.normal(kf, (B, future_length, state_dim), jnp.float32)
        future_actions = jax.random.randint(kfa, (B, future_length), 0, n_actions)

        out = jax.block_until_ready(
            fwd(params, state, memory_states, memory_actions,
                future_states, future_actions))
        ref = reference_forward(raw, state, memory_states, memory_actions,
                                future_states, future_actions, n_actions)

        assert out.shape == (B,), f"bad output shape {out.shape}"
        # Full-f32 kernel; tolerance covers MXU multi-pass / summation-order diffs.
        assert jnp.allclose(out, ref, atol=1e-3, rtol=1e-3), (B, out, ref)

    print("KERNEL_OK")
</pallas_src>

<mosaic_0001>
module attributes {stable_mosaic.version = 11 : i64} {
  func.func @_vfunc_kernel(%arg0: i32, %arg1: memref<2x20xf32, #tpu.memory_space<vmem>>, %arg2: memref<2x4xi32, #tpu.memory_space<vmem>>, %arg3: memref<20x128xf32, #tpu.memory_space<vmem>>, %arg4: memref<8x128xf32, #tpu.memory_space<vmem>>, %arg5: memref<1x128xf32, #tpu.memory_space<vmem>>, %arg6: memref<1x128xf32, #tpu.memory_space<vmem>>, %arg7: memref<1xf32, #tpu.memory_space<smem>>, %arg8: memref<1x2xf32, #tpu.memory_space<vmem>>) attributes {dimension_semantics = [#tpu.dimension_semantics<parallel>], iteration_bounds = array<i64: 1>, scalar_prefetch = 0 : i64, scratch_operands = 0 : i64, tpu.core_type = #tpu.core_type<tc>, window_params = [{transform_indices = @transform_0, window_bounds = array<i64: 2, 20>}, {transform_indices = @transform_1, window_bounds = array<i64: 2, 4>}, {pipeline_mode = #tpu.pipeline_mode<synchronous>, transform_indices = @transform_2, window_bounds = array<i64: 20, 128>}, {pipeline_mode = #tpu.pipeline_mode<synchronous>, transform_indices = @transform_3, window_bounds = array<i64: 8, 128>}, {pipeline_mode = #tpu.pipeline_mode<synchronous>, transform_indices = @transform_4, window_bounds = array<i64: 1, 128>}, {pipeline_mode = #tpu.pipeline_mode<synchronous>, transform_indices = @transform_5, window_bounds = array<i64: 1, 128>}, {transform_indices = @transform_6, window_bounds = array<i64: 1>}, {transform_indices = @transform_7, window_bounds = array<i64: 1, 2>}]} {
    %c0 = arith.constant 0 : index
    %c0_0 = arith.constant 0 : index
    %0 = vector.load %arg1[%c0, %c0_0] : memref<2x20xf32, #tpu.memory_space<vmem>>, vector<2x20xf32>
    %c0_1 = arith.constant 0 : index
    %c0_2 = arith.constant 0 : index
    %1 = vector.load %arg3[%c0_1, %c0_2] : memref<20x128xf32, #tpu.memory_space<vmem>>, vector<20x128xf32>
    %cst = arith.constant dense<0.000000e+00> : vector<2x128xf32>
    %2 = tpu.matmul %0, %1, %cst {dimension_numbers = #tpu.dot_dimension_numbers<[1], [0], [0], [1], [0, 0, 1, 1], [], []>} : vector<2x20xf32>, vector<20x128xf32>, vector<2x128xf32> -> vector<2x128xf32>
    %c0_3 = arith.constant 0 : index
    %c0_4 = arith.constant 0 : index
    %3 = vector.load %arg5[%c0_3, %c0_4] : memref<1x128xf32, #tpu.memory_space<vmem>>, vector<1x128xf32>
    %4 = vector.broadcast %3 : vector<1x128xf32> to vector<2x128xf32>
    %5 = arith.addf %2, %4 : vector<2x128xf32>
    %c0_5 = arith.constant 0 : index
    %c0_6 = arith.constant 0 : index
    %6 = vector.load %arg2[%c0_5, %c0_6] : memref<2x4xi32, #tpu.memory_space<vmem>>, vector<2x1xi32>
    %c0_i32 = arith.constant 0 : i32
    %7 = vector.broadcast %c0_i32 : i32 to vector<2x1xi32>
    %8 = arith.cmpi eq, %6, %7 : vector<2x1xi32>
    %c0_7 = arith.constant 0 : index
    %c0_8 = arith.constant 0 : index
    %9 = vector.load %arg4[%c0_7, %c0_8] : memref<8x128xf32, #tpu.memory_space<vmem>>, vector<1x128xf32>
    %c1 = arith.constant 1 : index
    %c0_9 = arith.constant 0 : index
    %10 = vector.load %arg4[%c1, %c0_9] : memref<8x128xf32, #tpu.memory_space<vmem>>, vector<1x128xf32>
    %11 = vector.shape_cast %8 : vector<2x1xi1> to vector<2x1xi1>
    %12 = vector.broadcast %11 : vector<2x1xi1> to vector<2x128xi1>
    %13 = vector.shape_cast %9 : vector<1x128xf32> to vector<1x128xf32>
    %14 = vector.broadcast %13 : vector<1x128xf32> to vector<2x128xf32>
    %15 = vector.shape_cast %10 : vector<1x128xf32> to vector<1x128xf32>
    %16 = vector.broadcast %15 : vector<1x128xf32> to vector<2x128xf32>
    %17 = arith.select %12, %14, %16 : vector<2x128xi1>, vector<2x128xf32>
    %18 = arith.addf %5, %17 : vector<2x128xf32>
    %c0_10 = arith.constant 0 : index
    %c1_11 = arith.constant 1 : index
    %19 = vector.load %arg2[%c0_10, %c1_11] : memref<2x4xi32, #tpu.memory_space<vmem>>, vector<2x1xi32>
    %c0_i32_12 = arith.constant 0 : i32
    %20 = vector.broadcast %c0_i32_12 : i32 to vector<2x1xi32>
    %21 = arith.cmpi eq, %19, %20 : vector<2x1xi32>
    %c2 = arith.constant 2 : index
    %c0_13 = arith.constant 0 : index
    %22 = vector.load %arg4[%c2, %c0_13] : memref<8x128xf32, #tpu.memory_space<vmem>>, vector<1x128xf32>
    %c3 = arith.constant 3 : index
    %c0_14 = arith.constant 0 : index
    %23 = vector.load %arg4[%c3, %c0_14] : memref<8x128xf32, #tpu.memory_space<vmem>>, vector<1x128xf32>
    %24 = vector.shape_cast %21 : vector<2x1xi1> to vector<2x1xi1>
    %25 = vector.broadcast %24 : vector<2x1xi1> to vector<2x128xi1>
    %26 = vector.shape_cast %22 : vector<1x128xf32> to vector<1x128xf32>
    %27 = vector.broadcast %26 : vector<1x128xf32> to vector<2x128xf32>
    %28 = vector.shape_cast %23 : vector<1x128xf32> to vector<1x128xf32>
    %29 = vector.broadcast %28 : vector<1x128xf32> to vector<2x128xf32>
    %30 = arith.select %25, %27, %29 : vector<2x128xi1>, vector<2x128xf32>
    %31 = arith.addf %18, %30 : vector<2x128xf32>
    %c0_15 = arith.constant 0 : index
    %c2_16 = arith.constant 2 : index
    %32 = vector.load %arg2[%c0_15, %c2_16] : memref<2x4xi32, #tpu.memory_space<vmem>>, vector<2x1xi32>
    %c0_i32_17 = arith.constant 0 : i32
    %33 = vector.broadcast %c0_i32_17 : i32 to vector<2x1xi32>
    %34 = arith.cmpi eq, %32, %33 : vector<2x1xi32>
    %c4 = arith.constant 4 : index
    %c0_18 = arith.constant 0 : index
    %35 = vector.load %arg4[%c4, %c0_18] : memref<8x128xf32, #tpu.memory_space<vmem>>, vector<1x128xf32>
    %c5 = arith.constant 5 : index
    %c0_19 = arith.constant 0 : index
    %36 = vector.load %arg4[%c5, %c0_19] : memref<8x128xf32, #tpu.memory_space<vmem>>, vector<1x128xf32>
    %37 = vector.shape_cast %34 : vector<2x1xi1> to vector<2x1xi1>
    %38 = vector.broadcast %37 : vector<2x1xi1> to vector<2x128xi1>
    %39 = vector.shape_cast %35 : vector<1x128xf32> to vector<1x128xf32>
    %40 = vector.broadcast %39 : vector<1x128xf32> to vector<2x128xf32>
    %41 = vector.shape_cast %36 : vector<1x128xf32> to vector<1x128xf32>
    %42 = vector.broadcast %41 : vector<1x128xf32> to vector<2x128xf32>
    %43 = arith.select %38, %40, %42 : vector<2x128xi1>, vector<2x128xf32>
    %44 = arith.addf %31, %43 : vector<2x128xf32>
    %c0_20 = arith.constant 0 : index
    %c3_21 = arith.constant 3 : index
    %45 = vector.load %arg2[%c0_20, %c3_21] : memref<2x4xi32, #tpu.memory_space<vmem>>, vector<2x1xi32>
    %c0_i32_22 = arith.constant 0 : i32
    %46 = vector.broadcast %c0_i32_22 : i32 to vector<2x1xi32>
    %47 = arith.cmpi eq, %45, %46 : vector<2x1xi32>
    %c6 = arith.constant 6 : index
    %c0_23 = arith.constant 0 : index
    %48 = vector.load %arg4[%c6, %c0_23] : memref<8x128xf32, #tpu.memory_space<vmem>>, vector<1x128xf32>
    %c7 = arith.constant 7 : index
    %c0_24 = arith.constant 0 : index
    %49 = vector.load %arg4[%c7, %c0_24] : memref<8x128xf32, #tpu.memory_space<vmem>>, vector<1x128xf32>
    %50 = vector.shape_cast %47 : vector<2x1xi1> to vector<2x1xi1>
    %51 = vector.broadcast %50 : vector<2x1xi1> to vector<2x128xi1>
    %52 = vector.shape_cast %48 : vector<1x128xf32> to vector<1x128xf32>
    %53 = vector.broadcast %52 : vector<1x128xf32> to vector<2x128xf32>
    %54 = vector.shape_cast %49 : vector<1x128xf32> to vector<1x128xf32>
    %55 = vector.broadcast %54 : vector<1x128xf32> to vector<2x128xf32>
    %56 = arith.select %51, %53, %55 : vector<2x128xi1>, vector<2x128xf32>
    %57 = arith.addf %44, %56 : vector<2x128xf32>
    %cst_25 = arith.constant 0.000000e+00 : f32
    %58 = vector.broadcast %cst_25 : f32 to vector<2x128xf32>
    %59 = arith.maximumf %57, %58 : vector<2x128xf32>
    %c0_26 = arith.constant 0 : index
    %c0_27 = arith.constant 0 : index
    %60 = vector.load %arg6[%c0_26, %c0_27] : memref<1x128xf32, #tpu.memory_space<vmem>>, vector<1x128xf32>
    %61 = vector.broadcast %60 : vector<1x128xf32> to vector<2x128xf32>
    %62 = arith.mulf %59, %61 : vector<2x128xf32>
    %cst_28 = arith.constant dense<0.000000e+00> : vector<2xf32>
    %63 = vector.multi_reduction <add>, %62, %cst_28 [1] : vector<2x128xf32> to vector<2xf32>
    %64 = vector.shape_cast %63 : vector<2xf32> to vector<1x2xf32>
    %c0_29 = arith.constant 0 : index
    %65 = memref.load %arg7[%c0_29] : memref<1xf32, #tpu.memory_space<smem>>
    %66 = vector.broadcast %65 : f32 to vector<1x2xf32>
    %67 = arith.addf %64, %66 : vector<1x2xf32>
    %c0_30 = arith.constant 0 : index
    %c0_31 = arith.constant 0 : index
    %68 = vector.load %arg8[%c0_30, %c0_31] : memref<1x2xf32, #tpu.memory_space<vmem>>, vector<1x2xf32>
    tpu.vector_store %arg8[%c0_30, %c0_31], %67 {strides = array<i32>} : memref<1x2xf32, #tpu.memory_space<vmem>>, vector<1x2xf32>,
    return
  }
  func.func @transform_0(%arg0: i32) -> (i32, i32) {
    %c0_i32 = arith.constant 0 : i32
    %c0_i32_0 = arith.constant 0 : i32
    return %arg0, %c0_i32 : i32, i32
  }
  func.func @transform_1(%arg0: i32) -> (i32, i32) {
    %c0_i32 = arith.constant 0 : i32
    %c0_i32_0 = arith.constant 0 : i32
    return %arg0, %c0_i32 : i32, i32
  }
  func.func @transform_2(%arg0: i32) -> (i32, i32) {
    %c0_i32 = arith.constant 0 : i32
    %c0_i32_0 = arith.constant 0 : i32
    %c0_i32_1 = arith.constant 0 : i32
    return %c0_i32, %c0_i32_0 : i32, i32
  }
  func.func @transform_3(%arg0: i32) -> (i32, i32) {
    %c0_i32 = arith.constant 0 : i32
    %c0_i32_0 = arith.constant 0 : i32
    %c0_i32_1 = arith.constant 0 : i32
    return %c0_i32, %c0_i32_0 : i32, i32
  }
  func.func @transform_4(%arg0: i32) -> (i32, i32) {
    %c0_i32 = arith.constant 0 : i32
    %c0_i32_0 = arith.constant 0 : i32
    %c0_i32_1 = arith.constant 0 : i32
    return %c0_i32, %c0_i32_0 : i32, i32
  }
  func.func @transform_5(%arg0: i32) -> (i32, i32) {
    %c0_i32 = arith.constant 0 : i32
    %c0_i32_0 = arith.constant 0 : i32
    %c0_i32_1 = arith.constant 0 : i32
    return %c0_i32, %c0_i32_0 : i32, i32
  }
  func.func @transform_6(%arg0: i32) -> i32 {
    %c0_i32 = arith.constant 0 : i32
    %c0_i32_0 = arith.constant 0 : i32
    return %c0_i32 : i32
  }
  func.func @transform_7(%arg0: i32) -> (i32, i32) {
    %c0_i32 = arith.constant 0 : i32
    %c0_i32_0 = arith.constant 0 : i32
    return %c0_i32, %arg0 : i32, i32
  }
}

</mosaic_0001>

<bundles_post_ra>
// kernel: forward.1
= control target key start
LH: loop header
LB: loop body
LE: loop exit
PB: predicated region body
PF: predicated region fallthrough
CT: control target
= control target key end

     0   :  { %13 = vsyncpa [#allocation4], 0  ;;  %s330_s0 = inlined_call_operand.vmem [shape: f32[2,20], index: 0, kind: input, shape index: {}]   ;;  %s331_s1 = inlined_call_operand.vmem [shape: s32[2,4], index: 1, kind: input, shape index: {}]   ;;  %s332_s2 = inlined_call_operand.hbm [shape: f32[20,128], index: 2, kind: input, shape index: {}]   ;;  %s333_s3 = inlined_call_operand.vmem [shape: f32[8,128], index: 3, kind: input, shape index: {}]   ;;  %s334_s4 = inlined_call_operand.vmem [shape: f32[1,128], index: 4, kind: input, shape index: {}]   ;;  %s335_s5 = inlined_call_operand.vmem [shape: f32[1,128], index: 5, kind: input, shape index: {}]   ;;  %s336_s6 = inlined_call_operand.<no memory space> [shape: f32[1], index: 6, kind: input, shape index: {}]   ;;  %s337_s7 = inlined_call_operand.hbm [shape: f32[1,2], index: 7, kind: output, shape index: {}]  }
   0x1   :  { %14 = vsyncpa [#allocation5], 0  ;;  %s23_s26 = sshll.u32 %s332_s2, 4  ;;  %s237_s27 = smov [#allocation3]   ;;  %s24_s26 = int_to_ptr.hbm [resolvable:$true] %s23_s26 }
   0x2   :  { %s25_s28 = sshll.u32 %s237_s27, 4  ;;  %s238_s29 = smov 128   ;;  %s26_s28 = int_to_ptr.vmem [resolvable:$true] %s25_s28 }
   0x3   :  { %s239_s30 = smov 8  }
   0x4   :  { %31 = dma.hbm_to_vmem [thread:$0]  %s24_s26, 384, %s26_s28, [#allocation4], %s238_s29, %s238_s29, %s239_s30  }
   0x5   :  { %233 = dma.done.wait [#allocation4], 384  }
   0x6   :  { %234 = vsyncadd [#allocation4], 4294966912  ;;  %v240_v0 = vmov 0   ;;  %v241_v1 = vmov 2   ;;  %vm56_vm0 = vcmask 1043456   ;;  %v46_v3 = vld [vmem:[#allocation3 + $0x8] sm:$0xff]  ;;  %v137_v37 = vlaneseq }
   0x7   :  { %170 = vset.pattern.permute.xlu0 %v240_v0  ;;  %172 = vset.pattern.permute.xlu1 %v241_v1  ;;  %v47_v2 = vld [vmem:[#allocation3 + $0x10] sm:$0xf]  ;;  %v80_v4 = vld [vmem:[%s331_s1] sm:$0x3]  ;;  %vm52_vm2 = vcmask 162816   ;;  %v242_v8 = vmov 1   ;;  %v134_v38 = vstv %s336_s6 }
   0x8   :  { %160 = vmatpush.msk.msra.mxu0 %vm56_vm0, %v47_v2  ;;  %v45_v5 = vld [vmem:[#allocation3] sm:$0xff]  ;;  %vm81_vm1 = vcmp.eq.s32.totalorder %v80_v4, 0  ;;  %v243_v9 = vmov 3   ;;  %vm129_vm7 = vcmask 1041408   ;;  %v138_v39 = vand.u32 127, %v137_v37  ;;  %s244_s29 = smov [#allocation6]  }
   0x9   :  { %v44_v6 = vld [vmem:[%s330_s0] sm:$0x3]  ;;  %v84_v7 = vsel %vm81_vm1, 1, %v240_v0  ;;  %v180_v16 = vld [vmem:[%s333_s3 + $0x2] ss:$0 sm:$0xff]  ;;  %s148_s30 = sshll.u32 %s244_s29, 4  ;;  %s149_s30 = int_to_ptr.vmem [resolvable:$true] %s148_s30 }
   0xa   :  { %74 = vmatpush.msra.mxu0 %v46_v3  ;;  %86 = vperm.xlu0 %170, %v84_v7   ;;  %v175_v13 = vld [vmem:[%s333_s3] ss:$0 sm:$0xff]  ;;  %v176_v15 = vld [vmem:[%s333_s3 + $0x1] ss:$0 sm:$0xff]  ;;  %v181_v17 = vld [vmem:[%s333_s3 + $0x3] ss:$0 sm:$0xff] }
   0xb   :  { %106 = vperm.xlu1 %172, %v84_v7   ;;  %v179_v14 = vld [vmem:[%s334_s4] ss:$0 sm:$0xff]  ;;  %v177_v20 = vld [vmem:[%s333_s3 + $0x4] ss:$0 sm:$0xff]  ;;  %v178_v23 = vld [vmem:[%s333_s3 + $0x5] ss:$0 sm:$0xff] }
   0xc   :  { %75 = vmatpush.msra.mxu0 %v45_v5  ;;  %v182_v25 = vld [vmem:[%s333_s3 + $0x6] ss:$0 sm:$0xff]  ;;  %v183_v26 = vld [vmem:[%s333_s3 + $0x7] ss:$0 sm:$0xff]  ;;  %v184_v33 = vld [vmem:[%s335_s5] ss:$0 sm:$0xff] }
   0xd   :  { %161 = vmatmul.msk.f32.vlgmr.msra.gmra.mxu0 %vm52_vm2, %v44_v6  ;;  %s150_s2 = sshll.u32 %s337_s7, 4  ;;  %vm141_vm8 = vcmask 8192   ;;  %s151_s2 = int_to_ptr.hbm [resolvable:$true] %s150_s2 }
  0x12   :  { %171 = vset.pattern.permute.xlu0 %v242_v8 }
  0x13   :  { %173 = vset.pattern.permute.xlu1 %v243_v9  ;;  %96 = vperm.xlu0 %171, %v84_v7  }
  0x14   :  { %116 = vperm.xlu1 %173, %v84_v7  }
  0x1b   :  { %174 = vset.pattern.permute.xlu0 %v243_v9 }
  0x7c   :  { %v87_v10 = vpop.permute.xlu0 %86 }
  0x7d   :  { %v107_v11 = vpop.permute.xlu1 %106  ;;  %vm88_vm3 = vcmp.eq.s32.totalorder %v87_v10, 1 }
  0x7e   :  { %v91_v22 = vsel %vm88_vm3, %v175_v13, %v176_v15  ;;  %vm108_vm5 = vcmp.eq.s32.totalorder %v107_v11, 1 }
  0x7f   :  { %v111_v29 = vsel %vm108_vm5, %v177_v20, %v178_v23 }
  0x85   :  { %v97_v12 = vpop.permute.xlu0 %96 }
  0x86   :  { %vm98_vm4 = vcmp.eq.s32.totalorder %v97_v12, 1  ;;  %v117_v19 = vpop.permute.xlu1 %116 }
  0x87   :  { %v101_v24 = vsel %vm98_vm4, %v180_v16, %v181_v17  ;;  %vm118_vm6 = vcmp.eq.s32.totalorder %v117_v19, 1 }
  0x88   :  { %v121_v30 = vsel %vm118_vm6, %v182_v25, %v183_v26 }
  0x8a   :  { %v77_v18 = vpop.f32.mrf.mxu0 }
  0x8b   :  { %v78_v21 = vadd.f32 %v179_v14, %v77_v18 }
  0x8d   :  { %v92_v27 = vadd.f32 %v91_v22, %v78_v21 }
  0x8f   :  { %v102_v28 = vadd.f32 %v101_v24, %v92_v27 }
  0x91   :  { %v112_v31 = vadd.f32 %v111_v29, %v102_v28 }
  0x93   :  { %v122_v32 = vadd.f32 %v121_v30, %v112_v31 }
  0x95   :  { %v123_v34 = vmax.f32 %v122_v32, 0.0 }
  0x97   :  { %v128_v35 = vmul.f32 %v184_v33, %v123_v34 }
  0x99   :  { %v130_v36 = vsel %vm129_vm7, %v128_v35, 0.0 }
  0x9a   :  { %131 = vadd.xlane.f32.xlu2 %v130_v36 }
 0x10d   :  { %v132_v40 = vpop.xlane.xlu2 %131 }
 0x10e   :  { %v135_v41 = vadd.f32 %v134_v38, %v132_v40 }
 0x110   :  { %v139_v42 = vperm.slane %v135_v41, %v138_v39 }
 0x112   :  { %142 = vst.msk [vmem:[#allocation6] sm:$0x1] %vm141_vm8, %v139_v42 }
 0x113   :  { %153 = dma.vmem_to_hbm [thread:$0]  %s149_s30, 16, %s151_s2, [#allocation5]  }
 0x114   :  { %235 = dma.done.wait [#allocation5], 16  }
 0x115   :  { %236 = vsyncadd [#allocation5], 4294967280 }
 0x116   :  { %158 = vsyncpa [#allocation4], 1 }
 0x117   :  { %159 = vsyncpa [#allocation5], 1 }

</bundles_post_ra>
